<compile_context>
chip_gen: v7x
topology: tpu7x:2x2x1
jax: 0.10.0
libtpu: 0.0.40
codegen_flags: <defaults>
</compile_context>

<pallas_src>
import jax
import jax.numpy as jnp
from jax import lax
from jax.experimental import pallas as pl
from jax.experimental.pallas import tpu as pltpu


def _round_up(v, m):
    return ((v + m - 1) // m) * m


def _vmem_estimate(tbp, K, rows_out):
    """Conservative per-call VMEM bytes for the block plan (everything counted
    as double-buffered, blocks padded to (8,128) f32 tiles)."""
    lane_k = _round_up(K, 128)
    x_blk = _round_up(tbp, 8) * lane_k * 4
    out_blk = _round_up(rows_out, 8) * _round_up(tbp, 128) * 4
    w1_blk = _round_up(K, 8) * lane_k * 4
    b1_blk = 8 * lane_k * 4
    w2_blk = _round_up(rows_out, 8) * lane_k * 4
    return 2 * (x_blk + out_blk + w1_blk + b1_blk + w2_blk)


def _mlp_kernel(b2_ref, x_ref, w1_ref, b1_ref, w2t_ref, o_ref):
    """One batch tile:  o^T = ReLU( W2'^T · ReLU(x' @ W1' + b1')^T + b2 )."""
    # Layer 1 (packed D->D): MXU matmul with f32 accumulation, bias+ReLU on VPU.
    h = jnp.dot(x_ref[...], w1_ref[...], preferred_element_type=jnp.float32)
    h = jnp.maximum(h + b1_ref[...], 0.0)                     # b1_ref (1,K) broadcasts
    # Layer 2 (packed D->1), computed directly in transposed orientation so the
    # output block is lane-dense: yT[p, b] = sum_k w2t[p, k] * h[b, k]
    # (the Q @ K^T contraction pattern; the MXU is otherwise idle here).
    yT = lax.dot_general(w2t_ref[...], h,
                         dimension_numbers=(((1,), (1,)), ((), ())),
                         preferred_element_type=jnp.float32)
    o_ref[...] = jnp.maximum(yT + b2_ref[0], 0.0).astype(o_ref.dtype)


def linear_forward(x, w1, b1, w2, b2, *,
                   target_tile_bytes=4 * 1024 * 1024,
                   vmem_block_budget=24 * 1024 * 1024):
    """x: [B, D]; w1: [D, D] (in, out); b1: [D]; w2: [D, 1]; b2: [1] -> [B, 1]."""
    B, D = x.shape
    out_dtype = x.dtype
    f32 = jnp.float32

    # ---- Lane packing (pack batch rows into lanes when D divides 128). ----
    pack = 128 // D if (D < 128 and 128 % D == 0) else 1
    K = pack * D
    Bpad = _round_up(B, pack)
    if Bpad != B:
        x = jnp.concatenate([x, jnp.zeros((Bpad - B, D), x.dtype)], axis=0)
    Bp = Bpad // pack
    xp = x.reshape(Bp, K)                      # row-major reshape: no data movement

    if pack > 1:
        eye = jnp.eye(pack, dtype=f32)
        w1p = jnp.kron(eye, w1.astype(f32))                      # (K, K) block-diag
        b1p = jnp.tile(b1.astype(f32), pack).reshape(1, K)       # (1, K)
        w2t = jnp.kron(eye, w2.astype(f32).reshape(1, D))        # (pack, K) block rows
    else:
        w1p = w1.astype(f32)
        b1p = b1.astype(f32).reshape(1, D)
        w2t = w2.astype(f32).reshape(1, D)
    # Pad the layer-2 rows to a full sublane group so every block is (8,128)-aligned.
    rows_out = max(8, _round_up(pack, 8))
    w2t8 = jnp.zeros((rows_out, K), f32).at[:pack, :].set(w2t)
    b2_vec = b2.reshape(1).astype(f32)                           # scalar prefetch -> SMEM

    # ---- Batch tile: biggest tile that fits the VMEM budget (multi-MiB of x per
    # step so per-step pipeline overhead is amortized). ----
    lane_k = _round_up(K, 128)
    tbp = max(128, target_tile_bytes // (lane_k * 4))
    # v7x has two TensorCores: keep the "parallel" batch grid at >= 2 steps when
    # there is enough work to split.
    if Bp >= 256:
        tbp = min(tbp, _round_up(pl.cdiv(Bp, 2), 128))
    while tbp > 128 and _vmem_estimate(tbp, K, rows_out) > vmem_block_budget:
        tbp = _round_up(tbp // 2, 128)
    tbp = min(tbp, Bp)
    if tbp < Bp:
        # Output lane-dim blocks must be multiples of 128 (lane-dense stores).
        tbp = max(128, (tbp // 128) * 128)
    grid = (pl.cdiv(Bp, tbp),)

    # Explicit scoped-VMEM limit: the v5e default is only 16 MiB; this stays well
    # within every generation's physical VMEM (v7x: 64 MiB).
    vmem_limit = int(min(48 * 1024 * 1024,
                         max(32 * 1024 * 1024,
                             2 * _vmem_estimate(tbp, K, rows_out))))
    # TODO(synk): for D >~ 2048 the resident (K,K) W1 no longer fits comfortably in
    # VMEM (esp. v7x's 64 MiB); add a K-tiled weight grid axis + f32 accumulator then.

    out = pl.pallas_call(
        _mlp_kernel,
        out_shape=jax.ShapeDtypeStruct((rows_out, Bp), out_dtype),
        grid_spec=pltpu.PrefetchScalarGridSpec(
            num_scalar_prefetch=1,                       # b2 lands in SMEM
            grid=grid,
            in_specs=[
                # x: streamed / double-buffered over the batch.
                pl.BlockSpec((tbp, K), lambda i, b2: (i, 0)),
                # Packed weights & biases: constant index_map => fetched once and
                # resident across all batch tiles (no per-step re-DMA).  Kept as
                # separate (tiny) inputs for lowering simplicity.
                pl.BlockSpec((K, K), lambda i, b2: (0, 0)),
                pl.BlockSpec((1, K), lambda i, b2: (0, 0)),
                pl.BlockSpec((rows_out, K), lambda i, b2: (0, 0)),
            ],
            # Lane-dense transposed output: (rows_out, tbp) blocks, unmasked stores.
            out_specs=pl.BlockSpec((rows_out, tbp), lambda i, b2: (0, i)),
        ),
        compiler_params=pltpu.CompilerParams(
            dimension_semantics=("parallel",),           # batch tiles -> both TCs on v7x
            vmem_limit_bytes=vmem_limit,
        ),
    )(b2_vec, xp, w1p, b1p, w2t8)

    # (rows_out, Bp) -> strip padded rows, un-transpose, un-pack -> (B, 1).
    return out[:pack, :].T.reshape(Bpad)[:B].reshape(B, 1)


def _reference(x, w1, b1, w2, b2):
    h = jnp.maximum(x @ w1 + b1, 0.0)
    return jnp.maximum(h @ w2 + b2, 0.0)


if __name__ == "__main__":
    x_len = 32        # D (feature size of the module)
    batch = 2048      # pack=4 -> 512 packed rows -> tile=256 -> grid=(2,)

    key = jax.random.PRNGKey(0)
    kx, kw1, kb1, kw2, kb2 = jax.random.split(key, 5)

    # Deterministic parameter init (uniform, PyTorch-Linear-like bound 1/sqrt(fan_in)).
    bound1 = 1.0 / jnp.sqrt(x_len)
    w1 = jax.random.uniform(kw1, (x_len, x_len), jnp.float32, -bound1, bound1)  # [in, out]
    b1 = jax.random.uniform(kb1, (x_len,), jnp.float32, -bound1, bound1)
    w2 = jax.random.uniform(kw2, (x_len, 1), jnp.float32, -bound1, bound1)      # [in, out]
    b2 = jax.random.uniform(kb2, (1,), jnp.float32, -bound1, bound1)

    x = jax.random.normal(kx, (batch, x_len), jnp.float32)

    out = jax.block_until_ready(linear_forward(x, w1, b1, w2, b2))
    ref = _reference(x, w1, b1, w2, b2)
    assert out.shape == (batch, 1), out.shape
    assert jnp.allclose(out, ref, atol=1e-4, rtol=1e-4), "mismatch vs reference (tiled)"

    # Small batch that is not a multiple of the lane-pack factor (exercises padding,
    # single-tile grid and masked partial rows/lanes).
    x_small = jax.random.normal(kx, (10, x_len), jnp.float32)
    out_small = jax.block_until_ready(linear_forward(x_small, w1, b1, w2, b2))
    assert out_small.shape == (10, 1), out_small.shape
    assert jnp.allclose(out_small, _reference(x_small, w1, b1, w2, b2),
                        atol=1e-4, rtol=1e-4), "mismatch vs reference (small)"

    print("KERNEL_OK")
</pallas_src>

<mosaic_0001>
module attributes {stable_mosaic.version = 11 : i64} {
  func.func @_mlp_kernel(%arg0: i32, %arg1: memref<1xf32, #tpu.memory_space<smem>>, %arg2: memref<256x128xf32, #tpu.memory_space<vmem>>, %arg3: memref<128x128xf32, #tpu.memory_space<vmem>>, %arg4: memref<1x128xf32, #tpu.memory_space<vmem>>, %arg5: memref<8x128xf32, #tpu.memory_space<vmem>>, %arg6: memref<8x256xf32, #tpu.memory_space<vmem>>) attributes {dimension_semantics = [#tpu.dimension_semantics<parallel>], iteration_bounds = array<i64: 2>, scalar_prefetch = 1 : i64, scratch_operands = 0 : i64, tpu.core_type = #tpu.core_type<tc>, window_params = [{transform_indices = @transform_0, window_bounds = array<i64: 256, 128>}, {pipeline_mode = #tpu.pipeline_mode<synchronous>, transform_indices = @transform_1, window_bounds = array<i64: 128, 128>}, {pipeline_mode = #tpu.pipeline_mode<synchronous>, transform_indices = @transform_2, window_bounds = array<i64: 1, 128>}, {pipeline_mode = #tpu.pipeline_mode<synchronous>, transform_indices = @transform_3, window_bounds = array<i64: 8, 128>}, {transform_indices = @transform_4, window_bounds = array<i64: 8, 256>}]} {
    %c0 = arith.constant 0 : index
    %c0_0 = arith.constant 0 : index
    %0 = vector.load %arg2[%c0, %c0_0] : memref<256x128xf32, #tpu.memory_space<vmem>>, vector<256x128xf32>
    %c0_1 = arith.constant 0 : index
    %c0_2 = arith.constant 0 : index
    %1 = vector.load %arg3[%c0_1, %c0_2] : memref<128x128xf32, #tpu.memory_space<vmem>>, vector<128x128xf32>
    %cst = arith.constant dense<0.000000e+00> : vector<256x128xf32>
    %2 = tpu.matmul %0, %1, %cst {dimension_numbers = #tpu.dot_dimension_numbers<[1], [0], [0], [1], [0, 0, 1, 1], [], []>} : vector<256x128xf32>, vector<128x128xf32>, vector<256x128xf32> -> vector<256x128xf32>
    %c0_3 = arith.constant 0 : index
    %c0_4 = arith.constant 0 : index
    %3 = vector.load %arg4[%c0_3, %c0_4] : memref<1x128xf32, #tpu.memory_space<vmem>>, vector<1x128xf32>
    %4 = vector.broadcast %3 : vector<1x128xf32> to vector<256x128xf32>
    %5 = arith.addf %2, %4 : vector<256x128xf32>
    %cst_5 = arith.constant 0.000000e+00 : f32
    %6 = vector.broadcast %cst_5 : f32 to vector<256x128xf32>
    %7 = arith.maximumf %5, %6 : vector<256x128xf32>
    %c0_6 = arith.constant 0 : index
    %c0_7 = arith.constant 0 : index
    %8 = vector.load %arg5[%c0_6, %c0_7] : memref<8x128xf32, #tpu.memory_space<vmem>>, vector<8x128xf32>
    %cst_8 = arith.constant dense<0.000000e+00> : vector<8x256xf32>
    %9 = tpu.matmul %8, %7, %cst_8 {dimension_numbers = #tpu.dot_dimension_numbers<[1], [1], [0], [0], [0, 0, 1, 0], [], []>} : vector<8x128xf32>, vector<256x128xf32>, vector<8x256xf32> -> vector<8x256xf32>
    %c0_9 = arith.constant 0 : index
    %10 = memref.load %arg1[%c0_9] : memref<1xf32, #tpu.memory_space<smem>>
    %11 = vector.broadcast %10 : f32 to vector<8x256xf32>
    %12 = arith.addf %9, %11 : vector<8x256xf32>
    %cst_10 = arith.constant 0.000000e+00 : f32
    %13 = vector.broadcast %cst_10 : f32 to vector<8x256xf32>
    %14 = arith.maximumf %12, %13 : vector<8x256xf32>
    %c0_11 = arith.constant 0 : index
    %c0_12 = arith.constant 0 : index
    %15 = vector.load %arg6[%c0_11, %c0_12] : memref<8x256xf32, #tpu.memory_space<vmem>>, vector<8x256xf32>
    tpu.vector_store %arg6[%c0_11, %c0_12], %14 {strides = array<i32>} : memref<8x256xf32, #tpu.memory_space<vmem>>, vector<8x256xf32>,
    return
  }
  func.func @transform_0(%arg0: i32, %arg1: memref<1xf32, #tpu.memory_space<smem>>) -> (i32, i32) {
    %c0_i32 = arith.constant 0 : i32
    %c0_i32_0 = arith.constant 0 : i32
    return %arg0, %c0_i32 : i32, i32
  }
  func.func @transform_1(%arg0: i32, %arg1: memref<1xf32, #tpu.memory_space<smem>>) -> (i32, i32) {
    %c0_i32 = arith.constant 0 : i32
    %c0_i32_0 = arith.constant 0 : i32
    %c0_i32_1 = arith.constant 0 : i32
    return %c0_i32, %c0_i32_0 : i32, i32
  }
  func.func @transform_2(%arg0: i32, %arg1: memref<1xf32, #tpu.memory_space<smem>>) -> (i32, i32) {
    %c0_i32 = arith.constant 0 : i32
    %c0_i32_0 = arith.constant 0 : i32
    %c0_i32_1 = arith.constant 0 : i32
    return %c0_i32, %c0_i32_0 : i32, i32
  }
  func.func @transform_3(%arg0: i32, %arg1: memref<1xf32, #tpu.memory_space<smem>>) -> (i32, i32) {
    %c0_i32 = arith.constant 0 : i32
    %c0_i32_0 = arith.constant 0 : i32
    %c0_i32_1 = arith.constant 0 : i32
    return %c0_i32, %c0_i32_0 : i32, i32
  }
  func.func @transform_4(%arg0: i32, %arg1: memref<1xf32, #tpu.memory_space<smem>>) -> (i32, i32) {
    %c0_i32 = arith.constant 0 : i32
    %c0_i32_0 = arith.constant 0 : i32
    return %c0_i32, %arg0 : i32, i32
  }
}

</mosaic_0001>

<bundles_post_ra>
// kernel: tpu_custom_call.1
= control target key start
LH: loop header
LB: loop body
LE: loop exit
PB: predicated region body
PF: predicated region fallthrough
CT: control target
= control target key end

     0   :  { %s1497_s0 = inlined_call_operand.<no memory space> [shape: f32[1], index: 0, kind: input, shape index: {}]   ;;  %s1498_s1 = inlined_call_operand.hbm [shape: f32[512,128], index: 1, kind: input, shape index: {}]   ;;  %s1499_s2 = inlined_call_operand.hbm [shape: f32[128,128], index: 2, kind: input, shape index: {}]   ;;  %s1500_s3 = inlined_call_operand.vmem [shape: f32[1,128], index: 3, kind: input, shape index: {}]   ;;  %s1501_s4 = inlined_call_operand.vmem [shape: f32[8,128], index: 4, kind: input, shape index: {}]   ;;  %s1502_s5 = inlined_call_operand.hbm [shape: f32[8,512], index: 5, kind: output, shape index: {}]  }
   0x1   :  { %10 = sst [smem:[#allocation3]] %s1497_s0 }
   0x2   :  { %11 = vsyncpa [#allocation5], 0 }
   0x3   :  { %13 = vsyncpa [#allocation5 + $0x1], 0 }
   0x4   :  { %14 = vsyncpa [#allocation8], 0 }
   0x5   :  { %15 = vsyncpa [#allocation6], 0 }
   0x6   :  { %17 = vsyncpa [#allocation6 + $0x1], 0  ;;  %s1192_s20 = smov 0   ;;  %s1194_s21 = smov 0  }
   0x7   :  { %s1196_s22 = smov 0   ;;  %s1198_s23 = smov 0  }
   0x8 LB: > { %s1213_s0 = sadd.s32 4294967295, %s1152_s23   ;;  %s720_s24 = sadd.s32 4294967294, %s1152_s23   ;;  %s1152_s23 = sphi %s1198_s23, %s1522_s23   ;;  %s1148_s22 = sphi %s1196_s22, %s1521_s22   ;;  %s1144_s21 = sphi %s1194_s21, %s1520_s21   ;;  %s1140_s20 = sphi %s1192_s20, %s1519_s20  }
   0x9   : > { %p43_p0 = scmp.ne.s32.totalorder %s1144_s21, %s1140_s20  ;;  %p1503_p1 = scmp.eq.s32.totalorder %s1213_s0, 0 }
   0xa   : > { %p136_p3 = scmp.eq.s32.totalorder %s720_s24, 1  ;;  %p721_p5 = scmp.ge.s32.totalorder %s1152_s23, 1 }
   0xb   : > { %p1222_p4 = por %p1503_p1, %p43_p0  ;;  %p143_p7 = scmp.lt.s32.totalorder %s1152_s23, 3 }
   0xc   : > { %p1227_p6 = por %p136_p3, %p43_p0  ;;  %s1154_s28 = smov [#allocation7]  }
   0xd   : > { %s1506_s25 = scalar_select %p1222_p4, 1, 0 }
   0xe   : > { %s1507_s26 = scalar_select %p1227_p6, 1, 0 }
   0xf   : > { %p1232_p8 = pnand %p721_p5, %p143_p7  ;;  %s155_s29 = sshll.u32 %s1154_s28, 4  ;;  %s1236_s29 = int_to_ptr.vmem [resolvable:$true] %s155_s29 }
  0x10   : > { %s1248_s6 = sadd.s32 1, %s1152_s23   ;;  %s30_s7 = sadd.s32 1, %s1148_s22 }
  0x11   : > { %s1508_s27 = scalar_select %p1232_p8, 1, 0 }
  0x12   : > { %p973_p9 = pneg %p1232_p8  ;;  %s27_s8 = ssub.s32 %s1152_s23, %s1248_s6 }
  0x13   : > { %s1024_s11 = scalar_lea.hbm %s1499_s2, 2048 }
  0x14   : > { %p1243_p11 = pnand %p973_p9, %p1503_p1  ;;  %p1025_p12 = scmp.ne.s32.totalorder %s1499_s2, %s1024_s11 }
  0x15   : > { %p1031_p5 = scmp.lt.u32.totalorder %s1024_s11, %s1499_s2 }
  0x16   : > { %p1026_p13 = pneg %p1243_p11 }
  0x18   : > { %p1027_p0 = pnand %p1026_p13, %p1025_p12 }
  0x1a   : > { %p1028_p3 = pneg %p1027_p0 }
  0x1c   : > { %p1033_p7 = pnand %p1031_p5, %p1028_p3 }
  0x1e   : > { %1036 = shalt.err (!%p1033_p7)
}
  0x1f   : > { %s1037_s16 = scalar_lea.vmem %s1236_s29, 2048  ;;  %p1045_p2 = scmp.lt.s32.totalorder %s1236_s29, %s1236_s29 }
  0x20   : > { %p1038_p9 = scmp.ne.s32.totalorder %s1236_s29, %s1037_s16  ;;  %p1046_p6 = scmp.lt.s32.totalorder %s1037_s16, %s1037_s16 }
  0x22   : > { %p1040_p10 = pnand %p1038_p9, %p1026_p13  ;;  %p1047_p4 = por %p1046_p6, %p1045_p2 }
  0x24   : > { %p1041_p1 = pneg %p1040_p10 }
  0x26   : > { %p1048_p8 = pnand %p1047_p4, %p1041_p1 }
  0x28   : > { %1051 = shalt.err (!%p1048_p8)
}
  0x29   : > { %s1155_s17 = smov 128   ;;  %s1156_s18 = smov 8  }
  0x2a   : > { %976 = dma.hbm_to_vmem [thread:$0]  (!%p1243_p11), %s1499_s2, 2048, %s1236_s29, [#allocation8], %s1155_s17, %s1155_s17, %s1156_s18  }
  0x2b   : > { %p28_p1 = scmp.eq.s32.totalorder %s27_s8, 0  ;;  %p37_p2 = scmp.ne.s32.totalorder %s1148_s22, %s1144_s21 }
  0x2c   : > { %p38_p4 = scmp.eq.s32.totalorder %s1152_s23, 0  ;;  %p986_p6 = scmp.lt.s32.totalorder %s1152_s23, 2 }
  0x2d   : > { %s1282_s28 = scalar_select %p28_p1, %s1148_s22, %s30_s7  }
  0x2e   : > { %p39_p8 = por %p38_p4, %p37_p2  ;;  %p1510_p10 = scmp.eq.s32.totalorder %s1213_s0, 1 }
  0x2f   : > { %s175_s30 = sand.u32 1, %s1148_s22   ;;  %s737_s10 = sshll.u32 %s1152_s23, 12 }
  0x30   : > { %p1286_p12 = por %p1510_p10, %p37_p2  ;;  %s724_s11 = sshll.u32 %s175_s30, 8 }
  0x31   : > { %s1295_s14 = scalar_lea.hbm %s1498_s1, %s737_s10  ;;  %s179_s29 = scalar_lea.vmem [#allocation4], %s724_s11 }
  0x32   : > { %s186_s7 = sshll.u32 %s179_s29, 4  ;;  %p1297_p11 = pnand %p986_p6, %p39_p8  ;;  %s1301_s7 = int_to_ptr.vmem [resolvable:$true] %s186_s7 }
  0x33   : > { %s1303_s15 = scalar_lea.sflag [#allocation5], %s175_s30  ;;  %s1052_s16 = scalar_lea.hbm %s1295_s14, 4096 }
  0x34   : > { %p1053_p13 = scmp.ne.s32.totalorder %s1295_s14, %s1052_s16  ;;  %p1054_p0 = pneg %p1297_p11 }
  0x35   : > { %s1057_s10 = scalar_lea.hbm %s1498_s1, 8192  ;;  %p1058_p7 = scmp.lt.u32.totalorder %s1295_s14, %s1498_s1 }
  0x36   : > { %p1055_p3 = pnand %p1054_p0, %p1053_p13  ;;  %p1059_p9 = scmp.lt.u32.totalorder %s1057_s10, %s1052_s16 }
  0x37   : > { %p1061_p2 = scmp.lt.u32.totalorder %s1052_s16, %s1295_s14 }
  0x38   : > { %p1056_p5 = pneg %p1055_p3  ;;  %p1060_p1 = por %p1059_p9, %p1058_p7 }
  0x3a   : > { %p1062_p4 = por %p1061_p2, %p1060_p1 }
  0x3c   : > { %p1063_p6 = pnand %p1062_p4, %p1056_p5 }
  0x3e   : > { %1066 = shalt.err (!%p1063_p6)
}
  0x3f   : > { %s1067_s30 = scalar_lea.vmem %s1301_s7, 4096  ;;  %s1157_s13 = smov [#allocation4]  }
  0x40   : > { %p1068_p8 = scmp.ne.s32.totalorder %s1301_s7, %s1067_s30  ;;  %s1072_s29 = sshll.u32 %s1157_s13, 4  ;;  %s1073_s29 = int_to_ptr.vmem [resolvable:$false] %s1072_s29 }
  0x41   : > { %s1074_s19 = scalar_lea.vmem %s1073_s29, 8192  ;;  %p1075_p3 = scmp.lt.s32.totalorder %s1301_s7, %s1073_s29 }
  0x42   : > { %p1070_p10 = pnand %p1068_p8, %p1054_p0  ;;  %p1076_p7 = scmp.lt.s32.totalorder %s1074_s19, %s1067_s30 }
  0x44   : > { %p1071_p13 = pneg %p1070_p10  ;;  %p1077_p9 = por %p1076_p7, %p1075_p3 }
  0x46   : > { %p1078_p1 = pnand %p1077_p9, %p1071_p13 }
  0x48   : > { %1081 = shalt.err (!%p1078_p1)
}
  0x49   : > { %980 = dma.hbm_to_vmem [thread:$0]  (!%p1297_p11), %s1295_s14, 4096, %s1301_s7, %s1303_s15, %s1155_s17, %s1155_s17, %s1156_s18  }
  0x4a   : > { %p1513_p0 = scmp.ne.s32.totalorder %s1508_s27, 0 }
  0x4b   : > { %s1337_s16 = sand.u32 (!%p1513_p0), 1, %s1144_s21   ;;  %p1514_p5 = scmp.ne.s32.totalorder (!%p1513_p0), %s1506_s25, 0 }
  0x4c   : > { %198 = sbr.rel (%p1513_p0) target bundleno = 668 (0x29c), region = 36  ;;  %s728_s24 = sshll.u32 (!%p1513_p0), %s1337_s16, 8 }
  0x4d   : > { %s201_s10 = scalar_lea.sflag (!%p1513_p0), [#allocation5], %s1337_s16  ;;  %s1341_s11 = scalar_lea.vmem (!%p1513_p0), [#allocation4], %s728_s24 }
  0x53   : > { %1127 = dma.done.wait (%p1514_p5), %s201_s10, 4096  }
  0x54   : > { %1129 = vsyncadd (%p1514_p5), %s201_s10, 4294963200  ;;  %p1515_p11 = scmp.eq.s32.totalorder %s1213_s0, 0 }
  0x56   : > { %1131 = dma.done.wait (%p1515_p11), [#allocation8], 2048   ;;  %p1516_p2 = pmov %p1515_p11 }
  0x57   : > { %v267_v0 = vld [vmem:[#allocation7] sm:$0xff]  ;;  %v268_v1 = vld [vmem:[#allocation7 + $0x8] sm:$0xff]  ;;  %v269_v2 = vld [vmem:[#allocation7 + $0x10] sm:$0xff]  ;;  %s548_s14 = sld [smem:[#allocation3]]  ;;  %s730_s7 = sshll.u32 %s1337_s16, 4 }
  0x58   : > { %1133 = vsyncadd (%p1516_p2), [#allocation8], 4294965248  ;;  %v901_v3 = vpack.c.bf16 %v268_v1, %v267_v0  ;;  %v270_v4 = vld [vmem:[#allocation7 + $0x18] sm:$0xff]  ;;  %v271_v6 = vld [vmem:[#allocation7 + $0x20] sm:$0xff]  ;;  %s738_s8 = sshll.u32 %s1213_s0, 8  ;;  %s232_s15 = scalar_lea.vmem [#allocation9], %s730_s7 }
  0x59   : > { %v905_v5 = vpack.c.bf16 %v270_v4, %v269_v2  ;;  %v272_v7 = vld [vmem:[#allocation7 + $0x28] sm:$0xff]  ;;  %v235_v9 = vld [vmem:[%s1341_s11] sm:$0xff]  ;;  %v273_v10 = vld [vmem:[#allocation7 + $0x30] sm:$0xff]  ;;  %s640_s12 = sshll.u32 %s232_s15, 4  ;;  %s1453_s29 = scalar_lea.hbm %s1502_s5, %s738_s8  ;;  %s1455_s12 = int_to_ptr.vmem [resolvable:$true] %s640_s12 }
  0x5a   : > { %902 = vmatprep.subr.bf16.mxu0 %v901_v3  ;;  %v909_v8 = vpack.c.bf16 %v272_v7, %v271_v6  ;;  %v274_v11 = vld [vmem:[#allocation7 + $0x38] sm:$0xff]  ;;  %853 = vmatprep.mubr.f32.mxu0 %v235_v9  ;;  %v275_v13 = vld [vmem:[#allocation7 + $0x40] sm:$0xff]  ;;  %v276_v14 = vld [vmem:[#allocation7 + $0x48] sm:$0xff]  ;;  %s626_s19 = scalar_lea.sflag [#allocation6], %s1337_s16  ;;  %s1082_s24 = scalar_lea.vmem %s1455_s12, 256 }
  0x5b   : > { %904 = vmatpush3.bf16.msra.mxu0 %v901_v3  ;;  %v913_v12 = vpack.c.bf16 %v274_v11, %v273_v10  ;;  %v917_v15 = vpack.c.bf16 %v276_v14, %v275_v13  ;;  %v277_v16 = vld [vmem:[#allocation7 + $0x50] sm:$0xff]  ;;  %v278_v17 = vld [vmem:[#allocation7 + $0x58] sm:$0xff]  ;;  %v279_v19 = vld [vmem:[#allocation7 + $0x60] sm:$0xff]  ;;  %p1083_p4 = scmp.ne.s32.totalorder %s1455_s12, %s1082_s24  ;;  %s1158_s0 = smov [#allocation9]  }
  0x5c   : > { %906 = vmatprep.subr.bf16.mxu0 %v905_v5  ;;  %v921_v18 = vpack.c.bf16 %v278_v17, %v277_v16  ;;  %v280_v20 = vld [vmem:[#allocation7 + $0x68] sm:$0xff]  ;;  %v281_v22 = vld [vmem:[#allocation7 + $0x70] sm:$0xff]  ;;  %v282_v23 = vld [vmem:[#allocation7 + $0x78] sm:$0xff]  ;;  %s1086_s10 = sshll.u32 %s1158_s0, 4  ;;  %s1087_s10 = int_to_ptr.vmem [resolvable:$false] %s1086_s10 }
  0x5d   : > { %v925_v21 = vpack.c.bf16 %v280_v20, %v279_v19  ;;  %v929_v24 = vpack.c.bf16 %v282_v23, %v281_v22  ;;  %v236_v25 = vld [vmem:[%s1341_s11 + $0x8] sm:$0xff]  ;;  %v237_v26 = vld [vmem:[%s1341_s11 + $0x10] sm:$0xff]  ;;  %v238_v27 = vld [vmem:[%s1341_s11 + $0x18] sm:$0xff]  ;;  %p1084_p6 = pnand %p1083_p4, %p1286_p12  ;;  %p1089_p10 = scmp.lt.s32.totalorder %s1455_s12, %s1087_s10 }
  0x5e   : > { %v239_v28 = vld [vmem:[%s1341_s11 + $0x20] sm:$0xff]  ;;  %v240_v29 = vld [vmem:[%s1341_s11 + $0x28] sm:$0xff]  ;;  %v241_v30 = vld [vmem:[%s1341_s11 + $0x30] sm:$0xff] }
  0x5f   : > { %908 = vmatpush3.bf16.msra.mxu0 %v905_v5  ;;  %v242_v31 = vld [vmem:[%s1341_s11 + $0x38] sm:$0xff]  ;;  %v243_v32 = vld [vmem:[%s1341_s11 + $0x40] sm:$0xff]  ;;  %v244_v33 = vld [vmem:[%s1341_s11 + $0x48] sm:$0xff]  ;;  %p1085_p8 = pneg %p1084_p6 }
  0x60   : > { %910 = vmatprep.subr.bf16.mxu0 %v909_v8  ;;  %v245_v34 = vld [vmem:[%s1341_s11 + $0x50] sm:$0xff]  ;;  %v246_v35 = vld [vmem:[%s1341_s11 + $0x58] sm:$0xff]  ;;  %v247_v36 = vld [vmem:[%s1341_s11 + $0x60] sm:$0xff] }
  0x61   : > { %v248_v37 = vld [vmem:[%s1341_s11 + $0x68] sm:$0xff]  ;;  %v249_v38 = vld [vmem:[%s1341_s11 + $0x70] sm:$0xff]  ;;  %v250_v39 = vld [vmem:[%s1341_s11 + $0x78] sm:$0xff] }
  0x62   : > { %v251_v40 = vld [vmem:[%s1341_s11 + $0x80] sm:$0xff]  ;;  %v252_v41 = vld [vmem:[%s1341_s11 + $0x88] sm:$0xff]  ;;  %v253_v42 = vld [vmem:[%s1341_s11 + $0x90] sm:$0xff] }
  0x63   : > { %912 = vmatpush3.bf16.msra.mxu0 %v909_v8  ;;  %v254_v43 = vld [vmem:[%s1341_s11 + $0x98] sm:$0xff]  ;;  %v255_v44 = vld [vmem:[%s1341_s11 + $0xa0] sm:$0xff]  ;;  %v256_v45 = vld [vmem:[%s1341_s11 + $0xa8] sm:$0xff] }
  0x64   : > { %914 = vmatprep.subr.bf16.mxu0 %v913_v12  ;;  %v257_v46 = vld [vmem:[%s1341_s11 + $0xb0] sm:$0xff]  ;;  %v258_v47 = vld [vmem:[%s1341_s11 + $0xb8] sm:$0xff]  ;;  %v259_v48 = vld [vmem:[%s1341_s11 + $0xc0] sm:$0xff] }
  0x65   : > { %v260_v49 = vld [vmem:[%s1341_s11 + $0xc8] sm:$0xff]  ;;  %v261_v50 = vld [vmem:[%s1341_s11 + $0xd0] sm:$0xff]  ;;  %v262_v51 = vld [vmem:[%s1341_s11 + $0xd8] sm:$0xff] }
  0x66   : > { %v263_v52 = vld [vmem:[%s1341_s11 + $0xe0] sm:$0xff]  ;;  %v264_v53 = vld [vmem:[%s1341_s11 + $0xe8] sm:$0xff]  ;;  %v265_v54 = vld [vmem:[%s1341_s11 + $0xf0] sm:$0xff] }
  0x67   : > { %916 = vmatpush3.bf16.msra.mxu0 %v913_v12  ;;  %v266_v55 = vld [vmem:[%s1341_s11 + $0xf8] sm:$0xff]  ;;  %v1386_v56 = vld [vmem:[%s1501_s4] sm:$0xff]  ;;  %s1088_s11 = scalar_lea.vmem %s1087_s10, 512 }
  0x68   : > { %918 = vmatprep.subr.bf16.mxu0 %v917_v15  ;;  %819 = vmatprep.mubr.f32.mxu1 %v1386_v56  ;;  %v1392_v57 = vld [vmem:[%s1500_s3] ss:$0 sm:$0xff]  ;;  %p1090_p13 = scmp.lt.s32.totalorder %s1088_s11, %s1082_s24 }
  0x6a   : > { %p1091_p3 = por %p1090_p13, %p1089_p10 }
  0x6b   : > { %920 = vmatpush3.bf16.msra.mxu0 %v917_v15 }
  0x6c   : > { %922 = vmatprep.subr.bf16.mxu0 %v921_v18  ;;  %p1092_p7 = pnand %p1091_p3, %p1085_p8 }
  0x6f   : > { %924 = vmatpush3.bf16.msra.mxu0 %v921_v18 }
  0x70   : > { %926 = vmatprep.subr.bf16.mxu0 %v925_v21 }
  0x73   : > { %928 = vmatpush3.bf16.msra.mxu0 %v925_v21 }
  0x74   : > { %930 = vmatprep.subr.bf16.mxu0 %v929_v24 }
  0x77   : > { %932 = vmatpush3.bf16.msra.mxu0 %v929_v24 }
  0x7a   : > { %854 = vmatmul.mubr.f32.vlgmr.msra.gmra.mrb[0].mxu0 %v236_v25 }
  0x7b   : > { %856 = vmatprep.mubr.f32.mxu0 %v237_v26 }
  0x7e   : > { %857 = vmatmul.mubr.f32.gmra.mrb[2].mxu0 %v238_v27 }
  0x7f   : > { %859 = vmatprep.mubr.f32.mxu0 %v239_v28 }
  0x82   : > { %860 = vmatmul.mubr.f32.gmra.mrb[4].mxu0 %v240_v29 }
  0x83   : > { %862 = vmatprep.mubr.f32.mxu0 %v241_v30 }
  0x86   : > { %863 = vmatmul.mubr.f32.gmra.mrb[6].mxu0 %v242_v31 }
  0x87   : > { %865 = vmatprep.mubr.f32.mxu0 %v243_v32 }
  0x8a   : > { %866 = vmatmul.mubr.f32.gmra.mrb[8].mxu0 %v244_v33 }
  0x8b   : > { %868 = vmatprep.mubr.f32.mxu0 %v245_v34 }
  0x8e   : > { %869 = vmatmul.mubr.f32.gmra.mrb[10].mxu0 %v246_v35 }
  0x8f   : > { %871 = vmatprep.mubr.f32.mxu0 %v247_v36 }
  0x92   : > { %872 = vmatmul.mubr.f32.gmra.mrb[12].mxu0 %v248_v37 }
  0x93   : > { %874 = vmatprep.mubr.f32.mxu0 %v249_v38 }
  0x96   : > { %875 = vmatmul.mubr.f32.gmra.mrb[14].mxu0 %v250_v39 }
  0x97   : > { %877 = vmatprep.mubr.f32.mxu0 %v251_v40 }
  0x9a   : > { %878 = vmatmul.mubr.f32.gmra.mrb[16].mxu0 %v252_v41 }
  0x9b   : > { %880 = vmatprep.mubr.f32.mxu0 %v253_v42 }
  0x9e   : > { %881 = vmatmul.mubr.f32.gmra.mrb[18].mxu0 %v254_v43 }
  0x9f   : > { %883 = vmatprep.mubr.f32.mxu0 %v255_v44 }
  0xa2   : > { %884 = vmatmul.mubr.f32.gmra.mrb[20].mxu0 %v256_v45 }
  0xa3   : > { %886 = vmatprep.mubr.f32.mxu0 %v257_v46 }
  0xa6   : > { %887 = vmatmul.mubr.f32.gmra.mrb[22].mxu0 %v258_v47 }
  0xa7   : > { %889 = vmatprep.mubr.f32.mxu0 %v259_v48 }
  0xaa   : > { %890 = vmatmul.mubr.f32.gmra.mrb[24].mxu0 %v260_v49 }
  0xab   : > { %892 = vmatprep.mubr.f32.mxu0 %v261_v50 }
  0xae   : > { %893 = vmatmul.mubr.f32.gmra.mrb[26].mxu0 %v262_v51 }
  0xaf   : > { %895 = vmatprep.mubr.f32.mxu0 %v263_v52 }
  0xb2   : > { %896 = vmatmul.mubr.f32.gmra.mrb[28].mxu0 %v264_v53 }
  0xb3   : > { %898 = vmatprep.mubr.f32.mxu0 %v265_v54 }
  0xb6   : > { %899 = vmatmul.mubr.f32.gmra.mrb[30].mxu0 %v266_v55 }
 0x14d   : > { %v855_v58 = vpop.f32.mrb[0].mxu0 }
 0x14e   : > { %v362_v59 = vadd.f32 %v855_v58, %v1392_v57  ;;  %v356_v60 = vpop.f32.mrb[1].mxu0 }
 0x14f   : > { %v357_v61 = vadd.f32 %v1392_v57, %v356_v60 }
 0x150   : > { %v516_v62 = vmax.f32 %v362_v59, 0.0 }
 0x151   : > { %v515_v63 = vmax.f32 %v357_v61, 0.0  ;;  %v858_v0 = vpop.f32.mrb[2].mxu0 }
 0x152   : > { %v372_v1 = vadd.f32 %v858_v0, %v1392_v57  ;;  %v366_v2 = vpop.f32.mrb[3].mxu0 }
 0x153   : > { %v367_v3 = vadd.f32 %v1392_v57, %v366_v2  ;;  %v935_v4 = vpack.c.bf16 %v516_v62, %v515_v63 }
 0x154   : > { %v518_v5 = vmax.f32 %v372_v1, 0.0 }
 0x155   : > { %v517_v6 = vmax.f32 %v367_v3, 0.0  ;;  %v861_v7 = vpop.f32.mrb[4].mxu0 }
 0x156   : > { %v382_v8 = vadd.f32 %v861_v7, %v1392_v57  ;;  %v376_v9 = vpop.f32.mrb[5].mxu0 }
 0x157   : > { %v1399_v10 = vpack.c.bf16 %v518_v5, %v517_v6  ;;  %v377_v11 = vadd.f32 %v1392_v57, %v376_v9 }
 0x158   : > { %v520_v12 = vmax.f32 %v382_v8, 0.0 }
 0x159   : > { %v519_v13 = vmax.f32 %v377_v11, 0.0  ;;  %v864_v14 = vpop.f32.mrb[6].mxu0 }
 0x15a   : > { %v392_v15 = vadd.f32 %v864_v14, %v1392_v57  ;;  %v386_v16 = vpop.f32.mrb[7].mxu0 }
 0x15b   : > { %v1403_v17 = vpack.c.bf16 %v520_v12, %v519_v13  ;;  %v387_v18 = vadd.f32 %v1392_v57, %v386_v16 }
 0x15c   : > { %v522_v19 = vmax.f32 %v392_v15, 0.0 }
 0x15d   : > { %v521_v20 = vmax.f32 %v387_v18, 0.0  ;;  %v867_v21 = vpop.f32.mrb[8].mxu0 }
 0x15e   : > { %v402_v22 = vadd.f32 %v867_v21, %v1392_v57  ;;  %v396_v23 = vpop.f32.mrb[9].mxu0 }
 0x15f   : > { %v1407_v24 = vpack.c.bf16 %v522_v19, %v521_v20  ;;  %v397_v25 = vadd.f32 %v1392_v57, %v396_v23 }
 0x160   : > { %v524_v26 = vmax.f32 %v402_v22, 0.0 }
 0x161   : > { %v523_v27 = vmax.f32 %v397_v25, 0.0  ;;  %v870_v28 = vpop.f32.mrb[10].mxu0 }
 0x162   : > { %v412_v29 = vadd.f32 %v870_v28, %v1392_v57  ;;  %v406_v30 = vpop.f32.mrb[11].mxu0 }
 0x163   : > { %v1411_v31 = vpack.c.bf16 %v524_v26, %v523_v27  ;;  %v407_v32 = vadd.f32 %v1392_v57, %v406_v30 }
 0x164   : > { %v526_v33 = vmax.f32 %v412_v29, 0.0 }
 0x165   : > { %v525_v34 = vmax.f32 %v407_v32, 0.0  ;;  %v873_v35 = vpop.f32.mrb[12].mxu0 }
 0x166   : > { %v422_v36 = vadd.f32 %v873_v35, %v1392_v57  ;;  %v416_v37 = vpop.f32.mrb[13].mxu0 }
 0x167   : > { %v1415_v38 = vpack.c.bf16 %v526_v33, %v525_v34  ;;  %v417_v39 = vadd.f32 %v1392_v57, %v416_v37 }
 0x168   : > { %v528_v40 = vmax.f32 %v422_v36, 0.0 }
 0x169   : > { %v527_v41 = vmax.f32 %v417_v39, 0.0  ;;  %v876_v42 = vpop.f32.mrb[14].mxu0 }
 0x16a   : > { %v432_v43 = vadd.f32 %v876_v42, %v1392_v57  ;;  %v426_v44 = vpop.f32.mrb[15].mxu0 }
 0x16b   : > { %v1419_v45 = vpack.c.bf16 %v528_v40, %v527_v41  ;;  %v427_v46 = vadd.f32 %v1392_v57, %v426_v44 }
 0x16c   : > { %v530_v47 = vmax.f32 %v432_v43, 0.0 }
 0x16d   : > { %v529_v48 = vmax.f32 %v427_v46, 0.0  ;;  %v879_v49 = vpop.f32.mrb[16].mxu0 }
 0x16e   : > { %v442_v50 = vadd.f32 %v879_v49, %v1392_v57  ;;  %v436_v51 = vpop.f32.mrb[17].mxu0 }
 0x16f   : > { %v1423_v52 = vpack.c.bf16 %v530_v47, %v529_v48  ;;  %v437_v53 = vadd.f32 %v1392_v57, %v436_v51 }
 0x170   : > { %v532_v54 = vmax.f32 %v442_v50, 0.0 }
 0x171   : > { %v531_v55 = vmax.f32 %v437_v53, 0.0  ;;  %v882_v58 = vpop.f32.mrb[18].mxu0 }
 0x172   : > { %v452_v59 = vadd.f32 %v882_v58, %v1392_v57  ;;  %v446_v60 = vpop.f32.mrb[19].mxu0 }
 0x173   : > { %v447_v61 = vadd.f32 %v1392_v57, %v446_v60  ;;  %v933_v62 = vpack.c.bf16 %v532_v54, %v531_v55 }
 0x174   : > { %v534_v63 = vmax.f32 %v452_v59, 0.0 }
 0x175   : > { %v533_v0 = vmax.f32 %v447_v61, 0.0  ;;  %934 = vmatprep.subr.bf16.mxu1 %v933_v62  ;;  %v885_v1 = vpop.f32.mrb[20].mxu0 }
 0x176   : > { %936 = vmatpush3.bf16.xpose.msra.mxu1 %v935_v4  ;;  %v462_v2 = vadd.f32 %v885_v1, %v1392_v57  ;;  %v456_v3 = vpop.f32.mrb[21].mxu0 }
 0x177   : > { %v937_v5 = vpack.c.bf16 %v534_v63, %v533_v0  ;;  %v457_v6 = vadd.f32 %v1392_v57, %v456_v3 }
 0x178   : > { %v536_v7 = vmax.f32 %v462_v2, 0.0 }
 0x179   : > { %938 = vmatprep.subr.bf16.mxu1 %v937_v5  ;;  %v535_v8 = vmax.f32 %v457_v6, 0.0  ;;  %v888_v9 = vpop.f32.mrb[22].mxu0 }
 0x17a   : > { %v472_v11 = vadd.f32 %v888_v9, %v1392_v57  ;;  %v466_v12 = vpop.f32.mrb[23].mxu0 }
 0x17b   : > { %v941_v13 = vpack.c.bf16 %v536_v7, %v535_v8  ;;  %v467_v14 = vadd.f32 %v1392_v57, %v466_v12 }
 0x17c   : > { %v538_v15 = vmax.f32 %v472_v11, 0.0 }
 0x17d   : > { %v537_v16 = vmax.f32 %v467_v14, 0.0  ;;  %v891_v18 = vpop.f32.mrb[24].mxu0 }
 0x17e   : > { %940 = vmatpush3.bf16.xpose.msra.mxu1 %v1399_v10  ;;  %v482_v4 = vadd.f32 %v891_v18, %v1392_v57  ;;  %v476_v19 = vpop.f32.mrb[25].mxu0 }
 0x17f   : > { %942 = vmatprep.subr.bf16.mxu1 %v941_v13  ;;  %v945_v20 = vpack.c.bf16 %v538_v15, %v537_v16  ;;  %v477_v21 = vadd.f32 %v1392_v57, %v476_v19 }
 0x180   : > { %v540_v22 = vmax.f32 %v482_v4, 0.0 }
 0x181   : > { %v539_v23 = vmax.f32 %v477_v21, 0.0  ;;  %v894_v25 = vpop.f32.mrb[26].mxu0 }
 0x182   : > { %v492_v26 = vadd.f32 %v894_v25, %v1392_v57  ;;  %v486_v27 = vpop.f32.mrb[27].mxu0 }
 0x183   : > { %v949_v28 = vpack.c.bf16 %v540_v22, %v539_v23  ;;  %v487_v29 = vadd.f32 %v1392_v57, %v486_v27 }
 0x184   : > { %v542_v30 = vmax.f32 %v492_v26, 0.0 }
 0x185   : > { %v541_v32 = vmax.f32 %v487_v29, 0.0  ;;  %v897_v33 = vpop.f32.mrb[28].mxu0 }
 0x186   : > { %944 = vmatpush3.bf16.xpose.msra.mxu1 %v1403_v17  ;;  %v502_v10 = vadd.f32 %v897_v33, %v1392_v57  ;;  %v496_v34 = vpop.f32.mrb[29].mxu0 }
 0x187   : > { %946 = vmatprep.subr.bf16.mxu1 %v945_v20  ;;  %v953_v35 = vpack.c.bf16 %v542_v30, %v541_v32  ;;  %v497_v36 = vadd.f32 %v1392_v57, %v496_v34 }
 0x188   : > { %v544_v37 = vmax.f32 %v502_v10, 0.0 }
 0x189   : > { %v543_v39 = vmax.f32 %v497_v36, 0.0  ;;  %v900_v40 = vpop.f32.mrb[30].mxu0 }
 0x18a   : > { %v512_v41 = vadd.f32 %v900_v40, %v1392_v57  ;;  %v506_v42 = vpop.f32.mrb[31].mxu0 }
 0x18b   : > { %v957_v43 = vpack.c.bf16 %v544_v37, %v543_v39  ;;  %v507_v44 = vadd.f32 %v1392_v57, %v506_v42  ;;  %v549_v57 = vstv %s548_s14 }
 0x18c   : > { %v546_v46 = vmax.f32 %v512_v41, 0.0 }
 0x18d   : > { %v545_v47 = vmax.f32 %v507_v44, 0.0 }
 0x18e   : > { %948 = vmatpush3.bf16.xpose.msra.mxu1 %v1407_v24 }
 0x18f   : > { %950 = vmatprep.subr.bf16.mxu1 %v949_v28  ;;  %v961_v17 = vpack.c.bf16 %v546_v46, %v545_v47 }
 0x196   : > { %952 = vmatpush3.bf16.xpose.msra.mxu1 %v1411_v31 }
 0x197   : > { %954 = vmatprep.subr.bf16.mxu1 %v953_v35 }
 0x19e   : > { %956 = vmatpush3.bf16.xpose.msra.mxu1 %v1415_v38 }
 0x19f   : > { %958 = vmatprep.subr.bf16.mxu1 %v957_v43 }
 0x1a6   : > { %960 = vmatpush3.bf16.xpose.msra.mxu1 %v1419_v45 }
 0x1a7   : > { %962 = vmatprep.subr.bf16.mxu1 %v961_v17 }
 0x1ae   : > { %964 = vmatpush3.bf16.xpose.msra.mxu1 %v1423_v52 }
 0x1b5   : > { %820 = vmatmul.mubr.f32.vlgmr.msra.gmra.mrb[0].mxu1 %v1386_v56 }
 0x288   : > { %v616_v24 = vpop.f32.mrb[0].mxu1 }
 0x289   : > { %v617_v48 = vadd.f32 %v616_v24, %v549_v57  ;;  %v618_v49 = vpop.f32.mrb[1].mxu1 }
 0x28a   : > { %v619_v31 = vadd.f32 %v618_v49, %v549_v57 }
 0x28b   : > { %v621_v38 = vmax.f32 %v617_v48, 0.0 }
 0x28c   : > { %v622_v50 = vmax.f32 %v619_v31, 0.0 }
 0x28d   : > { %623 = vst [vmem:[%s232_s15] sm:$0xff] %v621_v38 }
 0x28e   : > { %624 = vst [vmem:[%s232_s15 + $0x8] sm:$0xff] %v622_v50 }
 0x28f   : > { %1095 = shalt.err (!%p1092_p7)
}
 0x290   : > { %s1096_s16 = scalar_lea.hbm %s1453_s29, 256  ;;  %s1100_s17 = scalar_lea.hbm %s1502_s5, 512 }
 0x291   : > { %p1097_p9 = scmp.ne.s32.totalorder %s1453_s29, %s1096_s16  ;;  %p1101_p5 = scmp.lt.u32.totalorder %s1453_s29, %s1502_s5 }
 0x292   : > { %p1102_p11 = scmp.lt.u32.totalorder %s1100_s17, %s1096_s16  ;;  %p1104_p4 = scmp.lt.u32.totalorder %s1096_s16, %s1453_s29 }
 0x293   : > { %p1098_p1 = pnand %p1097_p9, %p1286_p12 }
 0x294   : > { %p1103_p2 = por %p1102_p11, %p1101_p5 }
 0x295   : > { %p1099_p0 = pneg %p1098_p1 }
 0x296   : > { %p1105_p6 = por %p1104_p4, %p1103_p2 }
 0x298   : > { %p1106_p8 = pnand %p1105_p6, %p1099_p0 }
 0x29a   : > { %1109 = shalt.err (!%p1106_p8)
}
 0x29b   : > { %971 = dma.vmem_to_hbm [thread:$0]  (%p1286_p12), %s1455_s12, 256, %s1453_s29, %s626_s19  }
 0x29c PF: > { %s652_s7 = sand.u32 1, %s1140_s20   ;;  %p1517_p10 = scmp.ne.s32.totalorder %s1507_s26, 0 }
 0x29d   : > { %p1518_p13 = scmp.ge.s32.totalorder %s1152_s23, 2  ;;  %s653_s8 = scalar_lea.sflag [#allocation6], %s652_s7 }
 0x29f   : > { %p982_p3 = pnand %p1518_p13, %p1517_p10 }
 0x2a1   : > { %1135 = dma.done.wait (!%p982_p3), %s653_s8, 256  }
 0x2a2   : > { %1137 = vsyncadd (!%p982_p3), %s653_s8, 4294967040  ;;  %p20_p7 = scmp.ge.s32.totalorder %s1248_s6, 4   ;;  %s1519_s20 = smov %s1144_s21 }
 0x2a3   : > { %s1520_s21 = smov %s1148_s22  ;;  %s1521_s22 = smov %s1282_s28 }
 0x2a4   : > { %s1522_s23 = smov %s1248_s6  ;;  %22 = sbr.rel (!%p20_p7) target bundleno = 8 (0x8), region = 85 }
 0x2ab   :  { %658 = vsyncpa [#allocation5], 1 }
 0x2ac   :  { %660 = vsyncpa [#allocation5 + $0x1], 1 }
 0x2ad   :  { %661 = vsyncpa [#allocation8], 1 }
 0x2ae   :  { %662 = vsyncpa [#allocation6], 1 }
 0x2af   :  { %664 = vsyncpa [#allocation6 + $0x1], 1 }

</bundles_post_ra>
